<compile_context>
chip_gen: v7x
topology: tpu7x:2x2x1
jax: 0.10.0
libtpu: 0.0.40
codegen_flags: <defaults>
</compile_context>

<pallas_src>
import functools

import jax
import jax.numpy as jnp
from jax.experimental import pallas as pl
from jax.experimental.pallas import tpu as pltpu


# Raised scoped-VMEM limit (safe on v5e / v6e / v7x) and the per-kernel tile budget.
# Pallas double-buffers both the input and the output block => ~4 live copies.
_VMEM_LIMIT_BYTES = 48 * 1024 * 1024
_TILE_VMEM_BUDGET = 20 * 1024 * 1024


def _accurate_reciprocal(s):
    # EUP approximate reciprocal (otherwise-idle slot) + Newton refinement back to
    # full fp32 accuracy. s has shape (row_tile, 1), so this is negligible work.
    r = pl.reciprocal(s, approx=True)
    r = r * (jnp.float32(2.0) - s * r)
    r = r * (jnp.float32(2.0) - s * r)
    return r


def _layernorm_kernel(x_ref, g_ref, b_ref, o_ref, *, eps):
    # x_ref: (row_tile, F) ; g_ref/b_ref: (1, F) ; normalization is per-row, so the
    # garbage rows of a ragged last block never contaminate valid rows (and their
    # stores are masked by Pallas anyway).
    x = x_ref[...].astype(jnp.float32)
    f = x.shape[-1]
    mean = jnp.mean(x, axis=-1, keepdims=True)
    d = x - mean
    # Unbiased variance (ddof=1), same as torch.Tensor.std default.
    # NOTE: requires features >= 2 (features == 1 would divide by zero).
    var = jnp.sum(d * d, axis=-1, keepdims=True) * jnp.float32(1.0 / (f - 1))
    s = jnp.sqrt(var) + jnp.float32(eps)
    inv = _accurate_reciprocal(s)
    y = g_ref[...].astype(jnp.float32) * (d * inv) + b_ref[...].astype(jnp.float32)
    o_ref[...] = y.astype(o_ref.dtype)


def _pick_row_tile(rows, features, dtype_bytes):
    """Largest multiple-of-8 row tile whose double-buffered in+out blocks fit the
    VMEM budget, capped so the grid keeps >=4 steps (v7x megacore sharding)."""
    max_rows = _TILE_VMEM_BUDGET // (4 * features * dtype_bytes)
    row_tile = int(max(8, min(1024, (max_rows // 8) * 8)))
    while row_tile > 8 and pl.cdiv(rows, row_tile) < 4:
        row_tile = max(8, ((row_tile // 2) // 8) * 8)
    return row_tile


def layer_normalization(x, gamma, beta, eps=1e-6, row_tile=None):
    """x: (..., F); gamma, beta: (F,). Returns same shape/dtype as x."""
    orig_shape = x.shape
    features = orig_shape[-1]
    x2 = x.reshape(-1, features)
    rows = x2.shape[0]

    if row_tile is None:
        row_tile = _pick_row_tile(rows, features, jnp.dtype(x.dtype).itemsize)

    g2 = gamma.reshape(1, features)
    b2 = beta.reshape(1, features)

    kernel = functools.partial(_layernorm_kernel, eps=eps)

    # Ragged tail block: Pallas pads out-of-bounds reads and masks out-of-bounds
    # stores, so no pre-padding copy of x is needed.
    # NOTE: for typical transformer hidden sizes (>=512) the feature axis is already
    # lane-dense (multiple of 128); small F (like the demo's 32) just uses masked
    # partial stores, which is fine for a demo-sized input.
    grid = (pl.cdiv(rows, row_tile),)

    out = pl.pallas_call(
        kernel,
        out_shape=jax.ShapeDtypeStruct((rows, features), x.dtype),
        grid_spec=pltpu.PrefetchScalarGridSpec(
            num_scalar_prefetch=0,
            grid=grid,
            in_specs=[
                pl.BlockSpec((row_tile, features), lambda i: (i, 0)),
                pl.BlockSpec((1, features), lambda i: (0, 0)),
                pl.BlockSpec((1, features), lambda i: (0, 0)),
            ],
            out_specs=pl.BlockSpec((row_tile, features), lambda i: (i, 0)),
        ),
        compiler_params=pltpu.CompilerParams(
            dimension_semantics=("parallel",),
            vmem_limit_bytes=_VMEM_LIMIT_BYTES,
        ),
    )(x2, g2, b2)

    return out.reshape(orig_shape)


if __name__ == "__main__":
    # Shapes implied by a transformer encoder layer-norm: (batch, seq, hidden)
    batch, seq, hidden = 2, 8, 32
    key = jax.random.PRNGKey(0)
    x = jax.random.normal(key, (batch, seq, hidden), dtype=jnp.float32)

    # Deterministic parameter init, matching nn.Parameter(torch.ones/zeros(features))
    gamma = jnp.ones((hidden,), dtype=jnp.float32)
    beta = jnp.zeros((hidden,), dtype=jnp.float32)

    out = layer_normalization(x, gamma, beta, eps=1e-6)
    out = jax.block_until_ready(out)

    # Reference in plain JAX (torch semantics: unbiased std, eps added to std)
    mean = jnp.mean(x, axis=-1, keepdims=True)
    std = jnp.std(x, axis=-1, keepdims=True, ddof=1)
    ref = gamma * (x - mean) / (std + 1e-6) + beta
    assert jnp.allclose(out, ref, atol=1e-5, rtol=1e-5), "mismatch vs reference"

    print("KERNEL_OK")
</pallas_src>

<mosaic_0001>
module attributes {stable_mosaic.version = 11 : i64} {
  func.func @_layernorm_kernel(%arg0: i32, %arg1: memref<8x32xf32, #tpu.memory_space<vmem>>, %arg2: memref<1x32xf32, #tpu.memory_space<vmem>>, %arg3: memref<1x32xf32, #tpu.memory_space<vmem>>, %arg4: memref<8x32xf32, #tpu.memory_space<vmem>>) attributes {dimension_semantics = [#tpu.dimension_semantics<parallel>], iteration_bounds = array<i64: 2>, scalar_prefetch = 0 : i64, scratch_operands = 0 : i64, tpu.core_type = #tpu.core_type<tc>, window_params = [{transform_indices = @transform_0, window_bounds = array<i64: 8, 32>}, {pipeline_mode = #tpu.pipeline_mode<synchronous>, transform_indices = @transform_1, window_bounds = array<i64: 1, 32>}, {pipeline_mode = #tpu.pipeline_mode<synchronous>, transform_indices = @transform_2, window_bounds = array<i64: 1, 32>}, {transform_indices = @transform_3, window_bounds = array<i64: 8, 32>}]} {
    %c0 = arith.constant 0 : index
    %c0_0 = arith.constant 0 : index
    %0 = vector.load %arg1[%c0, %c0_0] : memref<8x32xf32, #tpu.memory_space<vmem>>, vector<8x32xf32>
    %cst = arith.constant dense<0.000000e+00> : vector<8xf32>
    %1 = vector.multi_reduction <add>, %0, %cst [1] : vector<8x32xf32> to vector<8xf32>
    %2 = vector.shape_cast %1 : vector<8xf32> to vector<8x1xf32>
    %cst_1 = arith.constant 3.200000e+01 : f32
    %3 = vector.broadcast %cst_1 : f32 to vector<8x1xf32>
    %4 = arith.divf %2, %3 : vector<8x1xf32>
    %5 = vector.broadcast %4 : vector<8x1xf32> to vector<8x32xf32>
    %6 = arith.subf %0, %5 : vector<8x32xf32>
    %7 = arith.mulf %6, %6 : vector<8x32xf32>
    %cst_2 = arith.constant dense<0.000000e+00> : vector<8xf32>
    %8 = vector.multi_reduction <add>, %7, %cst_2 [1] : vector<8x32xf32> to vector<8xf32>
    %9 = vector.shape_cast %8 : vector<8xf32> to vector<8x1xf32>
    %cst_3 = arith.constant 0.0322580636 : f32
    %10 = vector.broadcast %cst_3 : f32 to vector<8x1xf32>
    %11 = arith.mulf %9, %10 : vector<8x1xf32>
    %12 = math.sqrt %11 : vector<8x1xf32>
    %cst_4 = arith.constant 9.99999997E-7 : f32
    %13 = vector.broadcast %cst_4 : f32 to vector<8x1xf32>
    %14 = arith.addf %12, %13 : vector<8x1xf32>
    %15 = tpu.reciprocal %14 {approx = true} : vector<8x1xf32> -> vector<8x1xf32>
    %16 = arith.mulf %14, %15 : vector<8x1xf32>
    %cst_5 = arith.constant 2.000000e+00 : f32
    %17 = vector.broadcast %cst_5 : f32 to vector<8x1xf32>
    %18 = arith.subf %17, %16 : vector<8x1xf32>
    %19 = arith.mulf %15, %18 : vector<8x1xf32>
    %20 = arith.mulf %14, %19 : vector<8x1xf32>
    %cst_6 = arith.constant 2.000000e+00 : f32
    %21 = vector.broadcast %cst_6 : f32 to vector<8x1xf32>
    %22 = arith.subf %21, %20 : vector<8x1xf32>
    %23 = arith.mulf %19, %22 : vector<8x1xf32>
    %c0_7 = arith.constant 0 : index
    %c0_8 = arith.constant 0 : index
    %24 = vector.load %arg2[%c0_7, %c0_8] : memref<1x32xf32, #tpu.memory_space<vmem>>, vector<1x32xf32>
    %25 = vector.broadcast %23 : vector<8x1xf32> to vector<8x32xf32>
    %26 = arith.mulf %6, %25 : vector<8x32xf32>
    %27 = vector.broadcast %24 : vector<1x32xf32> to vector<8x32xf32>
    %28 = arith.mulf %27, %26 : vector<8x32xf32>
    %c0_9 = arith.constant 0 : index
    %c0_10 = arith.constant 0 : index
    %29 = vector.load %arg3[%c0_9, %c0_10] : memref<1x32xf32, #tpu.memory_space<vmem>>, vector<1x32xf32>
    %30 = vector.broadcast %29 : vector<1x32xf32> to vector<8x32xf32>
    %31 = arith.addf %28, %30 : vector<8x32xf32>
    %c0_11 = arith.constant 0 : index
    %c0_12 = arith.constant 0 : index
    %32 = vector.load %arg4[%c0_11, %c0_12] : memref<8x32xf32, #tpu.memory_space<vmem>>, vector<8x32xf32>
    tpu.vector_store %arg4[%c0_11, %c0_12], %31 {strides = array<i32>} : memref<8x32xf32, #tpu.memory_space<vmem>>, vector<8x32xf32>,
    return
  }
  func.func @transform_0(%arg0: i32) -> (i32, i32) {
    %c0_i32 = arith.constant 0 : i32
    %c0_i32_0 = arith.constant 0 : i32
    return %arg0, %c0_i32 : i32, i32
  }
  func.func @transform_1(%arg0: i32) -> (i32, i32) {
    %c0_i32 = arith.constant 0 : i32
    %c0_i32_0 = arith.constant 0 : i32
    %c0_i32_1 = arith.constant 0 : i32
    return %c0_i32, %c0_i32_0 : i32, i32
  }
  func.func @transform_2(%arg0: i32) -> (i32, i32) {
    %c0_i32 = arith.constant 0 : i32
    %c0_i32_0 = arith.constant 0 : i32
    %c0_i32_1 = arith.constant 0 : i32
    return %c0_i32, %c0_i32_0 : i32, i32
  }
  func.func @transform_3(%arg0: i32) -> (i32, i32) {
    %c0_i32 = arith.constant 0 : i32
    %c0_i32_0 = arith.constant 0 : i32
    return %arg0, %c0_i32 : i32, i32
  }
}

</mosaic_0001>

<bundles_post_ra>
// kernel: tpu_custom_call.1
= control target key start
LH: loop header
LB: loop body
LE: loop exit
PB: predicated region body
PF: predicated region fallthrough
CT: control target
= control target key end

     0   :  { %8 = vsyncpa [#allocation3], 0  ;;  %s674_s0 = inlined_call_operand.hbm [shape: f32[16,32], index: 0, kind: input, shape index: {}]   ;;  %s675_s1 = inlined_call_operand.vmem [shape: f32[1,32], index: 1, kind: input, shape index: {}]   ;;  %s676_s2 = inlined_call_operand.vmem [shape: f32[1,32], index: 2, kind: input, shape index: {}]   ;;  %s677_s3 = inlined_call_operand.hbm [shape: f32[16,32], index: 3, kind: output, shape index: {}]  }
   0x1   :  { %10 = vsyncpa [#allocation3 + $0x1], 0 }
   0x2   :  { %11 = vsyncpa [#allocation4], 0 }
   0x3   :  { %13 = vsyncpa [#allocation4 + $0x1], 0  ;;  %s500_s12 = smov 0   ;;  %s502_s13 = smov 0  }
   0x4   :  { %s504_s14 = smov 0   ;;  %s506_s15 = smov 0  }
   0x5 LB: > { %s521_s16 = sadd.s32 4294967295, %s476_s15   ;;  %s316_s17 = sadd.s32 4294967294, %s476_s15   ;;  %s476_s15 = sphi %s506_s15, %s692_s15   ;;  %s472_s14 = sphi %s504_s14, %s691_s14   ;;  %s468_s13 = sphi %s502_s13, %s690_s13   ;;  %s464_s12 = sphi %s500_s12, %s689_s12  }
   0x6   : > { %s525_s18 = sadd.s32 1, %s476_s15   ;;  %s26_s19 = sadd.s32 1, %s472_s14 }
   0x7   : > { %s23_s20 = ssub.s32 %s476_s15, %s525_s18  ;;  %p33_p0 = scmp.ne.s32.totalorder %s472_s14, %s468_s13 }
   0x8   : > { %p24_p1 = scmp.eq.s32.totalorder %s23_s20, 0  ;;  %p34_p2 = scmp.eq.s32.totalorder %s476_s15, 0 }
   0x9   : > { %p39_p3 = scmp.ne.s32.totalorder %s468_s13, %s464_s12  ;;  %p40_p4 = scmp.eq.s32.totalorder %s521_s16, 0 }
   0xa   : > { %s537_s21 = scalar_select %p24_p1, %s472_s14, %s26_s19  }
   0xb   : > { %p539_p5 = por %p34_p2, %p33_p0  ;;  %p543_p6 = por %p40_p4, %p39_p3 }
   0xc   : > { %p105_p7 = scmp.eq.s32.totalorder %s521_s16, 1  ;;  %p111_p8 = scmp.eq.s32.totalorder %s316_s17, 1 }
   0xd   : > { %p342_p10 = scmp.lt.s32.totalorder %s476_s15, 2  ;;  %s137_s26 = sand.u32 1, %s472_s14  }
   0xe   : > { %p550_p11 = por %p105_p7, %p33_p0  ;;  %p554_p12 = por %p111_p8, %p39_p3 }
   0xf   : > { %s320_s27 = sshll.u32 %s476_s15, 7  ;;  %s319_s28 = sshll.u32 %s137_s26, 3 }
  0x10   : > { %s681_s24 = scalar_select %p550_p11, 1, 0 }
  0x11   : > { %s682_s25 = scalar_select %p554_p12, 1, 0 }
  0x12   : > { %s563_s4 = scalar_lea.hbm %s674_s0, %s320_s27  ;;  %s141_s5 = scalar_lea.vmem [#allocation2], %s319_s28 }
  0x13   : > { %s148_s6 = sshll.u32 %s141_s5, 4  ;;  %p567_p13 = pnand %p342_p10, %p539_p5  ;;  %s571_s6 = int_to_ptr.vmem [resolvable:$true] %s148_s6 }
  0x14   : > { %s138_s8 = scalar_lea.sflag [#allocation3], %s137_s26  ;;  %s380_s9 = scalar_lea.hbm %s563_s4, 128 }
  0x15   : > { %p381_p2 = scmp.ne.s32.totalorder %s563_s4, %s380_s9  ;;  %p382_p3 = pneg %p567_p13 }
  0x16   : > { %s385_s17 = scalar_lea.hbm %s674_s0, 256  ;;  %p386_p5 = scmp.lt.u32.totalorder %s563_s4, %s674_s0 }
  0x17   : > { %p383_p4 = pnand %p382_p3, %p381_p2  ;;  %p387_p8 = scmp.lt.u32.totalorder %s385_s17, %s380_s9 }
  0x18   : > { %p389_p9 = scmp.lt.u32.totalorder %s380_s9, %s563_s4 }
  0x19   : > { %p384_p7 = pneg %p383_p4  ;;  %p388_p10 = por %p387_p8, %p386_p5 }
  0x1b   : > { %p390_p0 = por %p389_p9, %p388_p10 }
  0x1d   : > { %p391_p1 = pnand %p390_p0, %p384_p7 }
  0x1f   : > { %394 = shalt.err (!%p391_p1)
}
  0x20   : > { %s395_s22 = scalar_lea.vmem %s571_s6, 128  ;;  %s478_s26 = smov [#allocation2]  }
  0x21   : > { %p396_p2 = scmp.ne.s32.totalorder %s571_s6, %s395_s22  ;;  %s400_s27 = sshll.u32 %s478_s26, 4  ;;  %s401_s27 = int_to_ptr.vmem [resolvable:$false] %s400_s27 }
  0x22   : > { %s402_s28 = scalar_lea.vmem %s401_s27, 256  ;;  %p403_p11 = scmp.lt.s32.totalorder %s571_s6, %s401_s27 }
  0x23   : > { %p398_p4 = pnand %p396_p2, %p382_p3  ;;  %p404_p5 = scmp.lt.s32.totalorder %s402_s28, %s395_s22 }
  0x25   : > { %p399_p12 = pneg %p398_p4  ;;  %p405_p8 = por %p404_p5, %p403_p11 }
  0x27   : > { %p406_p9 = pnand %p405_p8, %p399_p12 }
  0x29   : > { %409 = shalt.err (!%p406_p9)
}
  0x2a   : > { %337 = dma.hbm_to_vmem [thread:$0]  (!%p567_p13), %s563_s4, 128, %s571_s6, %s138_s8  }
  0x2b   : > { %p684_p0 = scmp.lt.s32.totalorder %s476_s15, 3  ;;  %p685_p1 = scmp.ge.s32.totalorder %s476_s15, 1 }
  0x2d   : > { %p154_p3 = pnand %p685_p1, %p684_p0 }
  0x2e   : > { %s605_s29 = sand.u32 (!%p154_p3), 1, %s468_s13  }
  0x2f   : > { %157 = sbr.rel (%p154_p3) target bundleno = 410 (0x19a), region = 32  ;;  %s322_s30 = sshll.u32 (!%p154_p3), %s605_s29, 3 }
  0x30   : > { %s160_s5 = scalar_lea.sflag (!%p154_p3), [#allocation3], %s605_s29  ;;  %s163_s7 = scalar_lea.vmem (!%p154_p3), [#allocation2], %s322_s30 }
  0x36   : > { %455 = dma.done.wait (%p543_p6), %s160_s5, 128  }
  0x37   : > { %457 = vsyncadd (%p543_p6), %s160_s5, 4294967168  ;;  %vm187_vm0 = vcmask 261120   ;;  %v186_v0 = vld [vmem:[%s163_s7] sm:$0xff]  ;;  %s327_s9 = sshll.u32 %s521_s16, 7  ;;  %s185_s10 = scalar_lea.vmem [#allocation5], %s322_s30 }
  0x38   : > { %v188_v1 = vsel %vm187_vm0, %v186_v0, 0.0  ;;  %v324_v22 = vld [vmem:[%s675_s1] ss:$0 sm:$0xff]  ;;  %s246_s11 = sshll.u32 %s185_s10, 4  ;;  %s629_s20 = scalar_lea.hbm %s677_s3, %s327_s9  ;;  %s631_s11 = int_to_ptr.vmem [resolvable:$true] %s246_s11 }
  0x39   : > { %189 = vadd.xlane.f32.xlu0 %v188_v1  ;;  %v325_v24 = vld [vmem:[%s676_s2] ss:$0 sm:$0xff]  ;;  %s233_s22 = scalar_lea.sflag [#allocation4], %s605_s29  ;;  %s410_s26 = scalar_lea.vmem %s631_s11, 128 }
  0x3a   : > { %p411_p6 = scmp.ne.s32.totalorder %s631_s11, %s410_s26  ;;  %p686_p11 = scmp.ne.s32.totalorder %s681_s24, 0 }
  0x3b   : > { %s479_s16 = smov [#allocation5]  }
  0x3c   : > { %p412_p12 = pnand %p411_p6, %p686_p11  ;;  %s414_s27 = sshll.u32 %s479_s16, 4  ;;  %s415_s27 = int_to_ptr.vmem [resolvable:$false] %s414_s27 }
  0x3d   : > { %s416_s28 = scalar_lea.vmem %s415_s27, 256  ;;  %p417_p7 = scmp.lt.s32.totalorder %s631_s11, %s415_s27 }
  0x3e   : > { %p413_p13 = pneg %p412_p12  ;;  %p418_p10 = scmp.lt.s32.totalorder %s416_s28, %s410_s26 }
  0x40   : > { %p419_p2 = por %p418_p10, %p417_p7 }
  0x42   : > { %p420_p4 = pnand %p419_p2, %p413_p13 }
  0xc6   : > { %v190_v2 = vpop.xlane.xlu0 %189 }
  0xc7   : > { %v192_v3 = vmul.f32 0.03125, %v190_v2 }
  0xc9   : > { %v193_v4 = vsub.f32 %v186_v0, %v192_v3 }
  0xcb   : > { %v194_v5 = vmul.f32 %v193_v4, %v193_v4 }
  0xcd   : > { %v195_v6 = vsel %vm187_vm0, %v194_v5, 0.0 }
  0xce   : > { %196 = vadd.xlane.f32.xlu0 %v195_v6 }
 0x15b   : > { %v197_v7 = vpop.xlane.xlu0 %196 }
 0x15c   : > { %v198_v8 = vmul.f32 0.032258064, %v197_v7 }
 0x15e   : > { %376 = vrsqrt.f32 %v198_v8  ;;  %vm201_vm1 = vcmp.eq.f32.partialorder %v198_v8, inf  ;;  %v204_v11 = vand.u32 2147483648, %v198_v8  ;;  %vm203_vm2 = vcmp.eq.f32.partialorder %v198_v8, 0.0 }
 0x168   : > { %v377_v9 = vpop.eup %376 }
 0x169   : > { %v200_v10 = vmul.f32 %v377_v9, %v198_v8 }
 0x16b   : > { %v202_v12 = vsel %vm201_vm1, %v198_v8, %v200_v10 }
 0x16c   : > { %v205_v13 = vsel %vm203_vm2, %v204_v11, %v202_v12 }
 0x16d   : > { %v206_v14 = vadd.f32 1e-06, %v205_v13 }
 0x16f   : > { %378 = vrcp.f32 %v206_v14 }
 0x179   : > { %v379_v15 = vpop.eup %378 }
 0x17a   : > { %v208_v16 = vmul.f32 %v379_v15, %v206_v14 }
 0x17c   : > { %v209_v17 = vsub.f32 2.0, %v208_v16 }
 0x17e   : > { %v210_v18 = vmul.f32 %v379_v15, %v209_v17 }
 0x180   : > { %v211_v19 = vmul.f32 %v210_v18, %v206_v14 }
 0x182   : > { %v212_v20 = vsub.f32 2.0, %v211_v19 }
 0x184   : > { %v213_v21 = vmul.f32 %v212_v20, %v210_v18 }
 0x186   : > { %v215_v23 = vmul.f32 %v213_v21, %v193_v4 }
 0x188   : > { %v222_v25 = vmul.f32 %v324_v22, %v215_v23 }
 0x18a   : > { %v230_v26 = vadd.f32 %v325_v24, %v222_v25 }
 0x18c   : > { %231 = vst.msk [vmem:[%s185_s10] sm:$0xff] %vm187_vm0, %v230_v26 }
 0x18d   : > { %423 = shalt.err (!%p420_p4)
}
 0x18e   : > { %s424_s29 = scalar_lea.hbm %s629_s20, 128  ;;  %s428_s7 = scalar_lea.hbm %s677_s3, 256 }
 0x18f   : > { %p425_p5 = scmp.ne.s32.totalorder %s629_s20, %s424_s29  ;;  %p429_p0 = scmp.lt.u32.totalorder %s629_s20, %s677_s3 }
 0x190   : > { %p430_p1 = scmp.lt.u32.totalorder %s428_s7, %s424_s29  ;;  %p432_p6 = scmp.lt.u32.totalorder %s424_s29, %s629_s20 }
 0x191   : > { %p426_p8 = pnand %p425_p5, %p686_p11 }
 0x192   : > { %p431_p3 = por %p430_p1, %p429_p0 }
 0x193   : > { %p427_p9 = pneg %p426_p8 }
 0x194   : > { %p433_p12 = por %p432_p6, %p431_p3 }
 0x196   : > { %p434_p13 = pnand %p433_p12, %p427_p9 }
 0x198   : > { %437 = shalt.err (!%p434_p13)
}
 0x199   : > { %332 = dma.vmem_to_hbm [thread:$0]  (%p686_p11), %s631_s11, 128, %s629_s20, %s233_s22  }
 0x19a PF: > { %s258_s6 = sand.u32 1, %s464_s12   ;;  %p687_p7 = scmp.ne.s32.totalorder %s682_s25, 0 }
 0x19b   : > { %p688_p10 = scmp.ge.s32.totalorder %s476_s15, 2  ;;  %s259_s8 = scalar_lea.sflag [#allocation4], %s258_s6 }
 0x19d   : > { %p339_p2 = pnand %p688_p10, %p687_p7 }
 0x19f   : > { %459 = dma.done.wait (!%p339_p2), %s259_s8, 128  }
 0x1a0   : > { %461 = vsyncadd (!%p339_p2), %s259_s8, 4294967168  ;;  %p16_p4 = scmp.ge.s32.totalorder %s525_s18, 4   ;;  %s689_s12 = smov %s468_s13 }
 0x1a1   : > { %s690_s13 = smov %s472_s14  ;;  %s691_s14 = smov %s537_s21 }
 0x1a2   : > { %s692_s15 = smov %s525_s18  ;;  %18 = sbr.rel (!%p16_p4) target bundleno = 5 (0x5), region = 77 }
 0x1a9   :  { %264 = vsyncpa [#allocation3], 1 }
 0x1aa   :  { %266 = vsyncpa [#allocation3 + $0x1], 1 }
 0x1ab   :  { %267 = vsyncpa [#allocation4], 1 }
 0x1ac   :  { %269 = vsyncpa [#allocation4 + $0x1], 1 }

</bundles_post_ra>
